<compile_context>
chip_gen: v6e
topology: v6e:2x2x1
jax: 0.10.0
libtpu: 0.0.40
codegen_flags: <defaults>
</compile_context>

<pallas_src>
import numpy as np
import jax
import jax.numpy as jnp
from jax.experimental import pallas as pl
from jax.experimental.pallas import tpu as pltpu

# ---- problem constants (from the PyTorch module) ----
N = 1
C_IN, H_IN, W_IN = 2, 6, 6
CT_OUT, CT_K, CT_S = 2, 5, 2                  # ConvTranspose2d(2, 2, 5, stride=2)
H1 = (H_IN - 1) * CT_S + CT_K                 # 15
W1 = (W_IN - 1) * CT_S + CT_K                 # 15
C_K = 3                                       # Conv2d(., 1, 3, stride=1)
C2_IN, C2_OUT = 2, 1
H2, W2 = H1 - C_K + 1, W1 - C_K + 1           # 13, 13

# matmul dims (K1 is already a multiple of 8, N2 padded to lane multiple)
K1 = C_IN * H_IN * W_IN                       # 72  (flattened input features)
N1 = CT_OUT * H1 * W1                         # 450 (intermediate, folded away)
N2 = C2_OUT * H2 * W2                         # 169 (flattened output features)
N2_P = 256                                    # lane-aligned padded output width


# -------------------- Pallas kernel --------------------
def fused_kernel(x_ref, m_ref, b_ref, o_ref):
    # single MXU pass: (1,72) @ (72,256) -> (1,256), then bias + tanh (EUP)
    y = jnp.dot(x_ref[...], m_ref[...], preferred_element_type=jnp.float32)
    o_ref[...] = jnp.tanh(y + b_ref[...])


# -------------------- one-time host-side weight folding --------------------
def build_conv_transpose_matrix(wt):
    # wt: (C_IN, CT_OUT, CT_K, CT_K)  (PyTorch ConvTranspose2d weight layout)
    m = np.zeros((K1, N1), dtype=np.float64)
    for ci in range(C_IN):
        for co in range(CT_OUT):
            for ih in range(H_IN):
                for iw in range(W_IN):
                    for kh in range(CT_K):
                        for kw in range(CT_K):
                            oh = ih * CT_S + kh
                            ow = iw * CT_S + kw
                            m[ci * H_IN * W_IN + ih * W_IN + iw,
                              co * H1 * W1 + oh * W1 + ow] += wt[ci, co, kh, kw]
    return m


def build_conv_matrix(wc):
    # wc: (C2_OUT, C2_IN, C_K, C_K)  (PyTorch Conv2d weight layout)
    m = np.zeros((N1, N2), dtype=np.float64)
    for co in range(C2_OUT):
        for ci in range(C2_IN):
            for oh in range(H2):
                for ow in range(W2):
                    for kh in range(C_K):
                        for kw in range(C_K):
                            m[ci * H1 * W1 + (oh + kh) * W1 + (ow + kw),
                              co * H2 * W2 + oh * W2 + ow] += wc[co, ci, kh, kw]
    return m


def prepare_fused_params(wt, bt, wc, bc):
    """Fold conv_transpose -> conv -> bias into one matrix + one bias row.

    Runs ONCE at weight-init time; returns device-resident padded jnp arrays.
    """
    m1 = build_conv_transpose_matrix(np.asarray(wt, np.float64))   # (K1, N1)
    m2 = build_conv_matrix(np.asarray(wc, np.float64))             # (N1, N2)
    b1 = np.repeat(np.asarray(bt, np.float64), H1 * W1)            # (N1,)
    b2 = np.repeat(np.asarray(bc, np.float64), H2 * W2)            # (N2,)

    # fuse:  (x @ M1 + b1) @ M2 + b2  ==  x @ (M1 @ M2) + (b1 @ M2 + b2)
    m_fused = m1 @ m2                                              # (K1, N2)
    b_fused = b1 @ m2 + b2                                         # (N2,)

    m_p = np.zeros((K1, N2_P), np.float32)                         # (72, 256)
    m_p[:, :N2] = m_fused
    b_p = np.zeros((1, N2_P), np.float32)                          # (1, 256)
    b_p[0, :N2] = b_fused
    return jnp.asarray(m_p), jnp.asarray(b_p)


# -------------------- forward (device-only per-call work) --------------------
_COST = pl.CostEstimate(
    flops=2 * N * K1 * N2_P,                  # one tiny MXU pass
    transcendentals=N * N2_P,                 # tanh
    bytes_accessed=(N * K1 + K1 * N2_P + N2_P + N * N2_P) * 4,
)


@jax.jit
def model_forward(x, m_p, b_p):
    # flatten on device (no zero-padding / staging buffer needed)
    x_flat = x.reshape(N, K1).astype(jnp.float32)                  # (1, 72)

    out = pl.pallas_call(
        fused_kernel,
        out_shape=jax.ShapeDtypeStruct((N, N2_P), jnp.float32),
        in_specs=[pl.BlockSpec(memory_space=pltpu.MemorySpace.VMEM)] * 3,
        out_specs=pl.BlockSpec(memory_space=pltpu.MemorySpace.VMEM),
        cost_estimate=_COST,
    )(x_flat, m_p, b_p)

    # valid region only (padded output columns are tanh(0)=0 and discarded)
    return out[:, :N2].reshape(N, C2_OUT, H2, W2)


# -------------------- independent numpy reference --------------------
def ref_forward(x, wt, bt, wc, bc):
    v1 = np.zeros((N, CT_OUT, H1, W1), np.float32)
    for ci in range(C_IN):
        for co in range(CT_OUT):
            for ih in range(H_IN):
                for iw in range(W_IN):
                    for kh in range(CT_K):
                        for kw in range(CT_K):
                            v1[0, co, ih * CT_S + kh, iw * CT_S + kw] += (
                                x[0, ci, ih, iw] * wt[ci, co, kh, kw])
    v1 += bt[None, :, None, None]
    v2 = np.zeros((N, C2_OUT, H2, W2), np.float32)
    for co in range(C2_OUT):
        for ci in range(C2_IN):
            for oh in range(H2):
                for ow in range(W2):
                    for kh in range(C_K):
                        for kw in range(C_K):
                            v2[0, co, oh, ow] += v1[0, ci, oh + kh, ow + kw] * wc[co, ci, kh, kw]
    v2 += bc[None, :, None, None]
    return np.tanh(v2)


if __name__ == "__main__":
    key = jax.random.PRNGKey(0)
    k1, k2, k3, k4, k5 = jax.random.split(key, 5)

    x = jax.random.normal(k1, (N, C_IN, H_IN, W_IN), jnp.float32)

    kt = 1.0 / np.sqrt(C_IN * CT_K * CT_K)
    wt = jax.random.uniform(k2, (C_IN, CT_OUT, CT_K, CT_K), jnp.float32, -kt, kt)
    bt = jax.random.uniform(k3, (CT_OUT,), jnp.float32, -kt, kt)

    kc = 1.0 / np.sqrt(C2_IN * C_K * C_K)
    wc = jax.random.uniform(k4, (C2_OUT, C2_IN, C_K, C_K), jnp.float32, -kc, kc)
    bc = jax.random.uniform(k5, (C2_OUT,), jnp.float32, -kc, kc)

    # one-time weight folding (host), then everything stays on device
    m_p, b_p = prepare_fused_params(wt, bt, wc, bc)

    out = jax.block_until_ready(model_forward(x, m_p, b_p))

    ref = ref_forward(np.asarray(x), np.asarray(wt), np.asarray(bt),
                      np.asarray(wc), np.asarray(bc))
    assert out.shape == (N, C2_OUT, H2, W2)
    np.testing.assert_allclose(np.asarray(out), ref, rtol=1e-4, atol=1e-4)
    print("KERNEL_OK")
</pallas_src>

<mosaic_0001>
module attributes {stable_mosaic.version = 11 : i64} {
  func.func @fused_kernel(%arg0: memref<1x72xf32, #tpu.memory_space<vmem>>, %arg1: memref<72x256xf32, #tpu.memory_space<vmem>>, %arg2: memref<1x256xf32, #tpu.memory_space<vmem>>, %arg3: memref<1x256xf32, #tpu.memory_space<vmem>>) attributes {dimension_semantics = [], scalar_prefetch = 0 : i64, scratch_operands = 0 : i64, tpu.core_type = #tpu.core_type<tc>} {
    %c0 = arith.constant 0 : index
    %c0_0 = arith.constant 0 : index
    %0 = vector.load %arg0[%c0, %c0_0] : memref<1x72xf32, #tpu.memory_space<vmem>>, vector<1x72xf32>
    %c0_1 = arith.constant 0 : index
    %c0_2 = arith.constant 0 : index
    %1 = vector.load %arg1[%c0_1, %c0_2] : memref<72x256xf32, #tpu.memory_space<vmem>>, vector<72x256xf32>
    %cst = arith.constant dense<0.000000e+00> : vector<1x256xf32>
    %2 = tpu.matmul %0, %1, %cst {dimension_numbers = #tpu.dot_dimension_numbers<[1], [0], [0], [1], [0, 0, 1, 1], [], []>} : vector<1x72xf32>, vector<72x256xf32>, vector<1x256xf32> -> vector<1x256xf32>
    %c0_3 = arith.constant 0 : index
    %c0_4 = arith.constant 0 : index
    %3 = vector.load %arg2[%c0_3, %c0_4] : memref<1x256xf32, #tpu.memory_space<vmem>>, vector<1x256xf32>
    %4 = arith.addf %2, %3 : vector<1x256xf32>
    %5 = math.tanh %4 : vector<1x256xf32>
    %c0_5 = arith.constant 0 : index
    %c0_6 = arith.constant 0 : index
    %6 = vector.load %arg3[%c0_5, %c0_6] : memref<1x256xf32, #tpu.memory_space<vmem>>, vector<1x256xf32>
    tpu.vector_store %arg3[%c0_5, %c0_6], %5 {strides = array<i32>} : memref<1x256xf32, #tpu.memory_space<vmem>>, vector<1x256xf32>,
    return
  }
}

</mosaic_0001>

<bundles_post_ra>
// kernel: model_forward.1
= control target key start
LH: loop header
LB: loop body
LE: loop exit
PB: predicated region body
PF: predicated region fallthrough
CT: control target
= control target key end

     0   :  { %8 = vsyncpa [#allocation3], 0  ;;  %s196_s12 = smov [#allocation2]   ;;  %s233_s0 = inlined_call_operand.vmem [shape: f32[1,72], index: 0, kind: input, shape index: {}]   ;;  %s234_s1 = inlined_call_operand.hbm [shape: f32[72,256], index: 1, kind: input, shape index: {}]   ;;  %s235_s2 = inlined_call_operand.vmem [shape: f32[1,256], index: 2, kind: input, shape index: {}]   ;;  %s236_s3 = inlined_call_operand.vmem [shape: f32[1,256], index: 3, kind: output, shape index: {}]  }
   0x1   :  { %s16_s13 = sshll.u32 %s196_s12, 4  ;;  %s17_s13 = int_to_ptr.vmem [resolvable:$true] %s16_s13 }
   0x2   :  { %s182_s14 = scalar_lea.vmem %s17_s13, 2304  ;;  %p187_p1 = scmp.lt.s32.totalorder %s17_s13, %s17_s13 }
   0x3   :  { %p183_p0 = scmp.ne.s32.totalorder %s17_s13, %s182_s14  ;;  %p188_p2 = scmp.lt.s32.totalorder %s182_s14, %s182_s14 }
   0x5   :  { %p189_p3 = por %p188_p2, %p187_p1 }
   0x7   :  { %p190_p4 = pnand %p189_p3, %p183_p0 }
   0x9   :  { %193 = shalt.err (!%p190_p4)
}
   0xa   :  { %s197_s15 = smov 256   ;;  %s198_s16 = smov 16  }
   0xb   :  { %22 = dma.hbm_to_vmem [thread:$0]  %s234_s1, 2304, %s17_s13, [#allocation3], %s197_s15, %s197_s15, %s198_s16  }
   0xc   :  { %194 = dma.done.wait [#allocation3], 2304  }
   0xd   :  { %195 = vsyncadd [#allocation3], 4294964992  ;;  %v199_v0 = vmov 0.0   ;;  %v46_v1 = vld [vmem:[#allocation2 + $0x88] sm:$0xff]  ;;  %v45_v2 = vld [vmem:[#allocation2 + $0x80] sm:$0xff]  ;;  %vm59_vm0 = vcmask 588800   ;;  %v49_v20 = vlaneseq }
   0xe   :  { %127 = vmatprep.mubr.f32.mxu0 %v199_v0  ;;  %v44_v3 = vld [vmem:[#allocation2 + $0x78] sm:$0xff]  ;;  %77 = vmatprep.subr.mxu0 %v46_v1  ;;  %v43_v4 = vld [vmem:[#allocation2 + $0x70] sm:$0xff]  ;;  %v42_v5 = vld [vmem:[#allocation2 + $0x68] sm:$0xff]  ;;  %v200_v31 = vmov 1966171168  }
   0xf   :  { %78 = vmatpush1.msra.mxu0 %v45_v2  ;;  %v41_v6 = vld [vmem:[#allocation2 + $0x60] sm:$0xff]  ;;  %v40_v7 = vld [vmem:[#allocation2 + $0x58] sm:$0xff]  ;;  %v39_v8 = vld [vmem:[#allocation2 + $0x50] sm:$0xff]  ;;  %v50_v21 = vshrl.u32 %v49_v20, 7  ;;  %v140_v32 = vunpack.c.l.s4 %v200_v31  ;;  %vm156_vm1 = vcmp.lt.s32.totalorder %v49_v20, 256 }
  0x10   :  { %79 = vmatprep.subr.mxu0 %v44_v3  ;;  %v38_v9 = vld [vmem:[#allocation2 + $0x48] sm:$0xff]  ;;  %v37_v10 = vld [vmem:[#allocation2 + $0x40] sm:$0xff]  ;;  %v36_v11 = vld [vmem:[#allocation2 + $0x38] sm:$0xff] }
  0x11   :  { %80 = vmatpush1.msra.mxu0 %v43_v4  ;;  %v35_v12 = vld [vmem:[#allocation2 + $0x30] sm:$0xff]  ;;  %v34_v13 = vld [vmem:[#allocation2 + $0x28] sm:$0xff]  ;;  %v33_v14 = vld [vmem:[#allocation2 + $0x20] sm:$0xff]  ;;  %v51_v22 = vsub.s32 0, %v50_v21  ;;  %v55_v24 = vsub.s32 1, %v50_v21  ;;  %v141_v33 = vunpack.c.0.s8 %v140_v32 }
  0x12   :  { %81 = vmatprep.subr.mxu0 %v42_v5  ;;  %v32_v15 = vld [vmem:[#allocation2 + $0x18] sm:$0xff]  ;;  %v31_v16 = vld [vmem:[#allocation2 + $0x10] sm:$0xff]  ;;  %v30_v17 = vld [vmem:[#allocation2 + $0x8] sm:$0xff] }
  0x13   :  { %82 = vmatpush1.msra.mxu0 %v41_v6  ;;  %v29_v18 = vld [vmem:[#allocation2] sm:$0xff]  ;;  %v144_v35 = vsub.s32 %v141_v33, %v50_v21 }
  0x14   :  { %83 = vmatprep.subr.mxu0 %v40_v7  ;;  %v28_v19 = vld [vmem:[%s233_s0] sm:$0x1] }
  0x15   :  { %84 = vmatpush1.msra.mxu0 %v39_v8  ;;  %v47_v23 = vld [vmem:[%s235_s2] sm:$0x3] }
  0x16   :  { %85 = vmatprep.subr.mxu0 %v38_v9  ;;  %v52_v25 = vrot.slane %v47_v23, %v51_v22  ;;  %v56_v26 = vrot.slane %v47_v23, %v55_v24 }
  0x17   :  { %86 = vmatpush1.msra.mxu0 %v37_v10 }
  0x18   :  { %87 = vmatprep.subr.mxu0 %v36_v11 }
  0x19   :  { %88 = vmatpush1.msra.mxu0 %v35_v12 }
  0x1a   :  { %89 = vmatprep.subr.mxu0 %v34_v13 }
  0x1b   :  { %90 = vmatpush1.msra.mxu0 %v33_v14 }
  0x1c   :  { %91 = vmatprep.subr.mxu0 %v32_v15 }
  0x1d   :  { %92 = vmatpush1.msra.mxu0 %v31_v16 }
  0x1e   :  { %93 = vmatprep.subr.mxu0 %v30_v17 }
  0x1f   :  { %94 = vmatpush1.msra.mxu0 %v29_v18 }
  0x20   :  { %164 = vmatmul.mubr.msk.f32.vlgmr.msra.gmra.mxu0 %vm59_vm0, %v28_v19 }
  0xe0   :  { %v129_v27 = vpop.f32.mrf.mxu0 }
  0xe1   :  { %v130_v28 = vadd.f32 %v129_v27, %v52_v25 }
  0xe2   :  { %v131_v29 = vpop.f32.mrf.mxu0 }
  0xe3   :  { %v132_v30 = vadd.f32 %v131_v29, %v56_v26  ;;  %170 = vtanh.f32 %v130_v28 }
  0xe5   :  { %172 = vtanh.f32 %v132_v30 }
  0xf0   :  { %v171_v34 = vpop.eup %170 }
  0xf2   :  { %v173_v36 = vpop.eup %172 }
  0xf3   :  { %v138_v37 = vcombine.low %v171_v34, %v173_v36 }
  0xf5   :  { %v145_v38 = vrot.slane %v138_v37, %v144_v35 }
  0xf7   :  { %v152_v39 = vrot.slane %v145_v38, %v144_v35 }
  0xf9   :  { %158 = vst.msk [vmem:[%s236_s3] sm:$0x3] %vm156_vm1, %v152_v39 }
  0xfa   :  { %163 = vsyncpa [#allocation3], 1 }

</bundles_post_ra>
